<compile_context>
chip_gen: v7x
topology: tpu7x:2x2x1
jax: 0.10.0
libtpu: 0.0.40
codegen_flags: <defaults>
</compile_context>

<pallas_src>
import functools

import jax
import jax.numpy as jnp
from jax.experimental import pallas as pl
from jax.experimental.pallas import tpu as pltpu


# ----------------------------- Pallas kernels ------------------------------ #

def _add_kernel(xd_ref, xt_ref, o_ref):
    o_ref[...] = (xd_ref[...] + xt_ref[...]).astype(o_ref.dtype)


def _mul_kernel(xd_ref, xt_ref, o_ref):
    o_ref[...] = (xd_ref[...] * xt_ref[...]).astype(o_ref.dtype)


def _concat_kernel(xd_ref, xt_ref, o_ref):
    d1 = xd_ref.shape[1]
    # d1 is guaranteed to be a multiple of 128 by the wrapper, so both stores
    # are lane-aligned (unmasked vst except possibly the very last vreg of o).
    o_ref[:, :d1] = xd_ref[...].astype(o_ref.dtype)
    o_ref[:, d1:] = xt_ref[...].astype(o_ref.dtype)


# --------------------------- tiling heuristics ------------------------------ #

def _round_down(x, m):
    return (x // m) * m


def _round_up(x, m):
    return ((x + m - 1) // m) * m


def _sublane_multiple(*dtypes) -> int:
    """Sub-32-bit dtypes pack along sublanes: 8 rows (4B), 16 (2B), 32 (1B)."""
    mult = 8
    for d in dtypes:
        itemsize = jnp.dtype(d).itemsize
        mult = max(mult, {4: 8, 2: 16, 1: 32}.get(itemsize, 8))
    return mult


def _vmem_limit_bytes() -> int:
    """Scoped VMEM to request: half of physical VMEM, capped at 64 MiB."""
    cap = None
    try:
        cap = getattr(pltpu.get_tpu_info(), "vmem_capacity_bytes", None)
    except Exception:
        cap = None
    if not cap:
        cap = 64 << 20  # conservative default (v7x per-TensorCore physical VMEM)
    return int(min(64 << 20, cap // 2))


def _pick_col_tile(D, per_elem_bytes, sublane, budget):
    """Full width if it fits the per-step budget at the min row tile; otherwise
    a multiple-of-128 (>=512 lanes) column tile."""
    if D <= 128 or sublane * D * per_elem_bytes <= budget:
        return D
    tc = _round_down(budget // (sublane * per_elem_bytes), 128)
    tc = max(tc, 512 if D >= 512 else 128)
    return min(tc, D)


def _pick_row_tile(B, per_row_bytes, sublane, budget, n_col_steps):
    """Largest sublane-aligned row tile within the byte budget, adjusted so the
    grid has >= 2 steps (v7x megacore) whenever B allows."""
    tb = _round_down(max(budget // max(per_row_bytes, 1), sublane), sublane)
    if tb >= B:
        tb = B  # full extent is always a legal block dim
    if B > sublane and pl.cdiv(B, tb) * n_col_steps < 2:
        tb = _round_up(pl.cdiv(B, 2), sublane)
    return tb


# ------------------------------ JAX wrapper -------------------------------- #

@functools.partial(jax.jit, static_argnames=("how",))
def simple_joint_forward(xd, xt, how: str):
    if xd.ndim != 2 or xt.ndim != 2:
        # TODO(synk): the PyTorch module accepts arbitrary-rank tensors; this
        # kernel covers the canonical 2-D (batch, features) joint-embedding use.
        raise ValueError("simple_joint_forward expects 2-D (batch, features) inputs")
    if xd.shape[0] != xt.shape[0]:
        raise ValueError("batch dimensions must match")

    # Note: jnp.result_type promotion may differ slightly from PyTorch for
    # exotic int/float mixes; identical for the common float cases.
    out_dtype = jnp.result_type(xd.dtype, xt.dtype)
    B, D1 = xd.shape
    _, D2 = xt.shape

    vmem_limit = _vmem_limit_bytes()
    # Sum of all block bytes per grid step (2 inputs + 1 output, single
    # buffer); double-buffering makes it ~2x, leave the rest as headroom.
    budget = vmem_limit // 4
    sublane = _sublane_multiple(xd.dtype, xt.dtype, out_dtype)
    s1 = jnp.dtype(xd.dtype).itemsize
    s2 = jnp.dtype(xt.dtype).itemsize
    so = jnp.dtype(out_dtype).itemsize

    if how == "concat":
        per_row = D1 * s1 + D2 * s2 + (D1 + D2) * so
        # Keep both column-slab stores lane-dense; concat is pure data movement,
        # so unaligned / extreme widths go to XLA's copy instead.
        # TODO(synk): a pure-DMA Pallas concat (make_async_copy into the two
        # column slabs of an ANY-space output) would cover unaligned / huge D.
        if D1 % 128 != 0 or sublane * per_row > budget:
            return jnp.concatenate(
                (xd.astype(out_dtype), xt.astype(out_dtype)), axis=1)
        tb = _pick_row_tile(B, per_row, sublane, budget, 1)
        grid = (pl.cdiv(B, tb),)
        kernel = _concat_kernel
        out_shape = jax.ShapeDtypeStruct((B, D1 + D2), out_dtype)
        in_specs = [pl.BlockSpec((tb, D1), lambda i: (i, 0)),
                    pl.BlockSpec((tb, D2), lambda i: (i, 0))]
        out_specs = pl.BlockSpec((tb, D1 + D2), lambda i: (i, 0))
        dims = ("parallel",)
    elif how in ("add", "multiple"):
        if xd.shape != xt.shape:
            raise ValueError("add/multiple require identical shapes")
        per_elem = s1 + s2 + so
        tc = _pick_col_tile(D1, per_elem, sublane, budget)
        n_col = pl.cdiv(D1, tc)
        tb = _pick_row_tile(B, tc * per_elem, sublane, budget, n_col)
        grid = (pl.cdiv(B, tb), n_col)
        kernel = _add_kernel if how == "add" else _mul_kernel
        out_shape = jax.ShapeDtypeStruct((B, D1), out_dtype)
        in_specs = [pl.BlockSpec((tb, tc), lambda i, j: (i, j)),
                    pl.BlockSpec((tb, tc), lambda i, j: (i, j))]
        out_specs = pl.BlockSpec((tb, tc), lambda i, j: (i, j))
        dims = ("parallel", "parallel")
    else:
        raise Exception(f"how {how} not supported")

    return pl.pallas_call(
        kernel,
        out_shape=out_shape,
        grid=grid,
        in_specs=in_specs,
        out_specs=out_specs,
        compiler_params=pltpu.CompilerParams(
            dimension_semantics=dims,
            vmem_limit_bytes=vmem_limit),
    )(xd, xt)


# ------------------------- pure-JAX references ------------------------------ #

def reference_forward(xd, xt, how: str):
    if how == "concat":
        out_dtype = jnp.result_type(xd.dtype, xt.dtype)
        return jnp.concatenate((xd.astype(out_dtype), xt.astype(out_dtype)), axis=1)
    elif how == "add":
        return xd + xt
    elif how == "multiple":
        return xd * xt
    else:
        raise Exception(f"how {how} not supported")


# ---------------------------------- main ----------------------------------- #

if __name__ == "__main__":
    key = jax.random.PRNGKey(0)
    k1, k2, k3, k4 = jax.random.split(key, 4)

    B, D1, D2 = 16, 256, 128
    xd = jax.random.normal(k1, (B, D1), jnp.float32)
    xt_same = jax.random.normal(k2, (B, D1), jnp.float32)   # for add / multiple
    xt_cat = jax.random.normal(k3, (B, D2), jnp.float32)    # for concat

    # ragged batch (exercises the cdiv grid / masked last block)
    xd_r = jax.random.normal(k4, (10, D1), jnp.float32)
    xt_r = xd_r * 0.5 + 1.0

    cases = [
        ("concat", xd, xt_cat),
        ("add", xd, xt_same),
        ("multiple", xd, xt_same),
        ("add", xd_r, xt_r),                              # B not multiple of 8
        ("add", xd.astype(jnp.bfloat16), xt_same),        # mixed dtype, in-kernel cast
    ]

    for how, a, b in cases:
        out = jax.block_until_ready(simple_joint_forward(a, b, how))
        ref = reference_forward(a, b, how)
        assert out.shape == ref.shape, (how, out.shape, ref.shape)
        assert out.dtype == ref.dtype, (how, out.dtype, ref.dtype)
        max_err = float(jnp.max(jnp.abs(out.astype(jnp.float32) - ref.astype(jnp.float32))))
        assert jnp.allclose(out, ref, atol=1e-6, rtol=1e-6), \
            f"{how}: max abs err = {max_err}"

    print("KERNEL_OK")
</pallas_src>

<mosaic_0001>
module attributes {stable_mosaic.version = 11 : i64} {
  func.func @_concat_kernel(%arg0: i32, %arg1: memref<8x256xf32, #tpu.memory_space<vmem>>, %arg2: memref<8x128xf32, #tpu.memory_space<vmem>>, %arg3: memref<8x384xf32, #tpu.memory_space<vmem>>) attributes {dimension_semantics = [#tpu.dimension_semantics<parallel>], iteration_bounds = array<i64: 2>, scalar_prefetch = 0 : i64, scratch_operands = 0 : i64, tpu.core_type = #tpu.core_type<tc>, window_params = [{transform_indices = @transform_0, window_bounds = array<i64: 8, 256>}, {transform_indices = @transform_1, window_bounds = array<i64: 8, 128>}, {transform_indices = @transform_2, window_bounds = array<i64: 8, 384>}]} {
    %c0 = arith.constant 0 : index
    %c0_0 = arith.constant 0 : index
    %0 = vector.load %arg1[%c0, %c0_0] : memref<8x256xf32, #tpu.memory_space<vmem>>, vector<8x256xf32>
    %c0_1 = arith.constant 0 : index
    %c0_2 = arith.constant 0 : index
    %1 = vector.load %arg3[%c0_1, %c0_2] : memref<8x384xf32, #tpu.memory_space<vmem>>, vector<8x256xf32>
    tpu.vector_store %arg3[%c0_1, %c0_2], %0 {strides = array<i32>} : memref<8x384xf32, #tpu.memory_space<vmem>>, vector<8x256xf32>,
    %c0_3 = arith.constant 0 : index
    %c0_4 = arith.constant 0 : index
    %2 = vector.load %arg2[%c0_3, %c0_4] : memref<8x128xf32, #tpu.memory_space<vmem>>, vector<8x128xf32>
    %c0_5 = arith.constant 0 : index
    %c256 = arith.constant 256 : index
    %3 = vector.load %arg3[%c0_5, %c256] : memref<8x384xf32, #tpu.memory_space<vmem>>, vector<8x128xf32>
    tpu.vector_store %arg3[%c0_5, %c256], %2 {strides = array<i32>} : memref<8x384xf32, #tpu.memory_space<vmem>>, vector<8x128xf32>,
    return
  }
  func.func @transform_0(%arg0: i32) -> (i32, i32) {
    %c0_i32 = arith.constant 0 : i32
    %c0_i32_0 = arith.constant 0 : i32
    return %arg0, %c0_i32 : i32, i32
  }
  func.func @transform_1(%arg0: i32) -> (i32, i32) {
    %c0_i32 = arith.constant 0 : i32
    %c0_i32_0 = arith.constant 0 : i32
    return %arg0, %c0_i32 : i32, i32
  }
  func.func @transform_2(%arg0: i32) -> (i32, i32) {
    %c0_i32 = arith.constant 0 : i32
    %c0_i32_0 = arith.constant 0 : i32
    return %arg0, %c0_i32 : i32, i32
  }
}

</mosaic_0001>

<bundles_post_ra>
// kernel: simple_joint_forward.1
= control target key start
LH: loop header
LB: loop body
LE: loop exit
PB: predicated region body
PF: predicated region fallthrough
CT: control target
= control target key end

     0   :  { %7 = vsyncpa [#allocation3], 0  ;;  %s734_s0 = inlined_call_operand.hbm [shape: f32[16,256], index: 0, kind: input, shape index: {}]   ;;  %s735_s1 = inlined_call_operand.hbm [shape: f32[16,128], index: 1, kind: input, shape index: {}]   ;;  %s736_s2 = inlined_call_operand.hbm [shape: f32[16,384], index: 2, kind: output, shape index: {}]  }
   0x1   :  { %9 = vsyncpa [#allocation3 + $0x1], 0 }
   0x2   :  { %10 = vsyncpa [#allocation6], 0 }
   0x3   :  { %12 = vsyncpa [#allocation6 + $0x1], 0 }
   0x4   :  { %13 = vsyncpa [#allocation4], 0 }
   0x5   :  { %15 = vsyncpa [#allocation4 + $0x1], 0  ;;  %s529_s9 = smov 0   ;;  %s531_s10 = smov 0  }
   0x6   :  { %s533_s11 = smov 0   ;;  %s535_s12 = smov 0  }
   0x7 LB: > { %s550_s13 = sadd.s32 4294967295, %s509_s12   ;;  %s311_s14 = sadd.s32 4294967294, %s509_s12   ;;  %s509_s12 = sphi %s535_s12, %s755_s12   ;;  %s505_s11 = sphi %s533_s11, %s754_s11   ;;  %s501_s10 = sphi %s531_s10, %s753_s10   ;;  %s497_s9 = sphi %s529_s9, %s752_s9  }
   0x8   : > { %s554_s15 = sadd.s32 1, %s509_s12   ;;  %s28_s16 = sadd.s32 1, %s505_s11 }
   0x9   : > { %s25_s17 = ssub.s32 %s509_s12, %s554_s15  ;;  %p35_p0 = scmp.ne.s32.totalorder %s505_s11, %s501_s10 }
   0xa   : > { %p26_p1 = scmp.eq.s32.totalorder %s25_s17, 0  ;;  %p36_p2 = scmp.eq.s32.totalorder %s509_s12, 0 }
   0xb   : > { %p41_p3 = scmp.ne.s32.totalorder %s501_s10, %s497_s9  ;;  %p42_p4 = scmp.eq.s32.totalorder %s550_s13, 0 }
   0xc   : > { %s566_s18 = scalar_select %p26_p1, %s505_s11, %s28_s16  }
   0xd   : > { %p568_p5 = por %p36_p2, %p35_p0  ;;  %p572_p6 = por %p42_p4, %p41_p3 }
   0xe   : > { %p91_p7 = scmp.eq.s32.totalorder %s550_s13, 1  ;;  %p97_p8 = scmp.eq.s32.totalorder %s311_s14, 1 }
   0xf   : > { %s740_s20 = scalar_select %p572_p6, 1, 0 }
  0x10   : > { %p345_p10 = scmp.lt.s32.totalorder %s509_s12, 2  ;;  %p579_p11 = por %p91_p7, %p35_p0 }
  0x11   : > { %p583_p12 = por %p97_p8, %p41_p3  ;;  %s588_s23 = sand.u32 1, %s505_s11  }
  0x12   : > { %s741_s21 = scalar_select %p579_p11, 1, 0 }
  0x13   : > { %s742_s22 = scalar_select %p583_p12, 1, 0 }
  0x14   : > { %s325_s24 = sshll.u32 %s509_s12, 8  ;;  %s314_s25 = sshll.u32 %s588_s23, 4 }
  0x15   : > { %s595_s28 = scalar_lea.hbm %s734_s0, %s325_s24  ;;  %s121_s29 = scalar_lea.vmem [#allocation2], %s314_s25 }
  0x16   : > { %s129_s30 = sshll.u32 %s121_s29, 4  ;;  %p599_p13 = pnand %p345_p10, %p568_p5  ;;  %s603_s30 = int_to_ptr.vmem [resolvable:$true] %s129_s30 }
  0x17   : > { %s118_s4 = scalar_lea.sflag [#allocation3], %s588_s23  ;;  %s379_s5 = scalar_lea.hbm %s595_s28, 256 }
  0x18   : > { %p380_p2 = scmp.ne.s32.totalorder %s595_s28, %s379_s5  ;;  %p381_p3 = pneg %p599_p13 }
  0x19   : > { %s384_s8 = scalar_lea.hbm %s734_s0, 512  ;;  %p385_p5 = scmp.lt.u32.totalorder %s595_s28, %s734_s0 }
  0x1a   : > { %p382_p4 = pnand %p381_p3, %p380_p2  ;;  %p386_p8 = scmp.lt.u32.totalorder %s384_s8, %s379_s5 }
  0x1b   : > { %p388_p9 = scmp.lt.u32.totalorder %s379_s5, %s595_s28 }
  0x1c   : > { %p383_p7 = pneg %p382_p4  ;;  %p387_p10 = por %p386_p8, %p385_p5 }
  0x1e   : > { %p389_p0 = por %p388_p9, %p387_p10 }
  0x20   : > { %p390_p1 = pnand %p389_p0, %p383_p7 }
  0x22   : > { %393 = shalt.err (!%p390_p1)
}
  0x23   : > { %s394_s17 = scalar_lea.vmem %s603_s30, 256  ;;  %s511_s19 = smov [#allocation2]  }
  0x24   : > { %p395_p2 = scmp.ne.s32.totalorder %s603_s30, %s394_s17  ;;  %s399_s24 = sshll.u32 %s511_s19, 4  ;;  %s400_s24 = int_to_ptr.vmem [resolvable:$false] %s399_s24 }
  0x25   : > { %s401_s25 = scalar_lea.vmem %s400_s24, 512  ;;  %p402_p11 = scmp.lt.s32.totalorder %s603_s30, %s400_s24 }
  0x26   : > { %p397_p4 = pnand %p395_p2, %p381_p3  ;;  %p403_p5 = scmp.lt.s32.totalorder %s401_s25, %s394_s17 }
  0x28   : > { %p398_p12 = pneg %p397_p4  ;;  %p404_p8 = por %p403_p5, %p402_p11 }
  0x2a   : > { %p405_p9 = pnand %p404_p8, %p398_p12 }
  0x2c   : > { %408 = shalt.err (!%p405_p9)
}
  0x2d   : > { %337 = dma.hbm_to_vmem [thread:$0]  (!%p599_p13), %s595_s28, 256, %s603_s30, %s118_s4  }
  0x2e   : > { %p744_p0 = scmp.lt.s32.totalorder %s509_s12, 3  ;;  %p745_p1 = scmp.ge.s32.totalorder %s509_s12, 1 }
  0x2f   : > { %s317_s27 = sshll.u32 %s588_s23, 3  ;;  %s318_s29 = sshll.u32 %s509_s12, 7 }
  0x30   : > { %p637_p7 = pnand %p745_p1, %p744_p0  ;;  %s646_s7 = scalar_lea.hbm %s735_s1, %s318_s29 }
  0x31   : > { %s140_s8 = scalar_lea.vmem [#allocation5], %s317_s27  ;;  %s137_s28 = scalar_lea.sflag [#allocation6], %s588_s23 }
  0x32   : > { %s746_s26 = scalar_select %p637_p7, 1, 0 }
  0x33   : > { %s147_s14 = sshll.u32 %s140_s8, 4  ;;  %s409_s30 = scalar_lea.hbm %s646_s7, 128  ;;  %s148_s14 = int_to_ptr.vmem [resolvable:$true] %s147_s14 }
  0x34   : > { %p410_p11 = scmp.ne.s32.totalorder %s646_s7, %s409_s30  ;;  %s414_s17 = scalar_lea.hbm %s735_s1, 256 }
  0x35   : > { %p415_p2 = scmp.lt.u32.totalorder %s646_s7, %s735_s1  ;;  %p416_p4 = scmp.lt.u32.totalorder %s414_s17, %s409_s30 }
  0x36   : > { %p412_p12 = pnand %p410_p11, %p381_p3  ;;  %p418_p8 = scmp.lt.u32.totalorder %s409_s30, %s646_s7 }
  0x37   : > { %p417_p5 = por %p416_p4, %p415_p2 }
  0x38   : > { %p413_p10 = pneg %p412_p12 }
  0x39   : > { %p419_p9 = por %p418_p8, %p417_p5 }
  0x3b   : > { %p420_p0 = pnand %p419_p9, %p413_p10 }
  0x3d   : > { %423 = shalt.err (!%p420_p0)
}
  0x3e   : > { %s424_s23 = scalar_lea.vmem %s148_s14, 128  ;;  %s512_s25 = smov [#allocation5]  }
  0x3f   : > { %p425_p1 = scmp.ne.s32.totalorder %s148_s14, %s424_s23  ;;  %s429_s27 = sshll.u32 %s512_s25, 4  ;;  %s430_s27 = int_to_ptr.vmem [resolvable:$false] %s429_s27 }
  0x40   : > { %s431_s29 = scalar_lea.vmem %s430_s27, 256  ;;  %p432_p6 = scmp.lt.s32.totalorder %s148_s14, %s430_s27 }
  0x41   : > { %p427_p11 = pnand %p425_p1, %p381_p3  ;;  %p433_p7 = scmp.lt.s32.totalorder %s431_s29, %s424_s23 }
  0x43   : > { %p428_p12 = pneg %p427_p11  ;;  %p434_p2 = por %p433_p7, %p432_p6 }
  0x45   : > { %p435_p4 = pnand %p434_p2, %p428_p12 }
  0x47   : > { %438 = shalt.err (!%p435_p4)
}
  0x48   : > { %340 = dma.hbm_to_vmem [thread:$0]  (!%p599_p13), %s646_s7, 128, %s148_s14, %s137_s28  }
  0x49   : > { %p747_p10 = scmp.ne.s32.totalorder %s746_s26, 0 }
  0x4a   : > { %s671_s5 = sand.u32 (!%p747_p10), 1, %s501_s10   ;;  %p748_p3 = scmp.ne.s32.totalorder (!%p747_p10), %s740_s20, 0 }
  0x4b   : > { %156 = sbr.rel (%p747_p10) target bundleno = 112 (0x70), region = 28  ;;  %s320_s6 = sshll.u32 (!%p747_p10), %s671_s5, 4 }
  0x4c   : > { %s159_s8 = scalar_lea.sflag (!%p747_p10), [#allocation3], %s671_s5  ;;  %s162_s30 = scalar_lea.vmem (!%p747_p10), [#allocation2], %s320_s6 }
  0x52   : > { %484 = dma.done.wait (%p748_p3), %s159_s8, 256  }
  0x53   : > { %486 = vsyncadd (%p748_p3), %s159_s8, 4294967040  ;;  %s321_s3 = sshll.u32 %s671_s5, 3  ;;  %s168_s26 = scalar_lea.sflag [#allocation6], %s671_s5 }
  0x54   : > { %s171_s7 = scalar_lea.vmem [#allocation5], %s321_s3 }
  0x55   : > { %488 = dma.done.wait (%p748_p3), %s168_s26, 128  }
  0x56   : > { %490 = vsyncadd (%p748_p3), %s168_s26, 4294967168  ;;  %s326_s14 = smul.u32 24, %s671_s5  ;;  %v197_v0 = vld [vmem:[%s162_s30] sm:$0xff]  ;;  %v198_v1 = vld [vmem:[%s162_s30 + $0x8] sm:$0xff]  ;;  %s204_s20 = scalar_lea.sflag [#allocation4], %s671_s5 }
  0x57   : > { %s327_s28 = smul.u32 384, %s550_s13  ;;  %v201_v2 = vld [vmem:[%s171_s7] sm:$0xff]  ;;  %p749_p13 = scmp.ne.s32.totalorder %s741_s21, 0 }
  0x58   : > { %s196_s4 = scalar_lea.vmem [#allocation7], %s326_s14  ;;  %s513_s23 = smov [#allocation7]  }
  0x59   : > { %s218_s16 = sshll.u32 %s196_s4, 4  ;;  %s692_s24 = scalar_lea.hbm %s736_s2, %s327_s28  ;;  %199 = vst [vmem:[%s196_s4] sm:$0xff] %v197_v0  ;;  %200 = vst [vmem:[%s196_s4 + $0x8] sm:$0xff] %v198_v1  ;;  %s687_s16 = int_to_ptr.vmem [resolvable:$true] %s218_s16 }
  0x5a   : > { %202 = vst [vmem:[%s196_s4 + $0x10] sm:$0xff] %v201_v2  ;;  %s439_s13 = scalar_lea.vmem %s687_s16, 384  ;;  %s443_s25 = sshll.u32 %s513_s23, 4  ;;  %s444_s25 = int_to_ptr.vmem [resolvable:$false] %s443_s25 }
  0x5b   : > { %p440_p6 = scmp.ne.s32.totalorder %s687_s16, %s439_s13  ;;  %s445_s27 = scalar_lea.vmem %s444_s25, 768 }
  0x5c   : > { %p446_p8 = scmp.lt.s32.totalorder %s687_s16, %s444_s25  ;;  %p447_p9 = scmp.lt.s32.totalorder %s445_s27, %s439_s13 }
  0x5d   : > { %p441_p7 = pnand %p440_p6, %p749_p13 }
  0x5e   : > { %p448_p0 = por %p447_p9, %p446_p8 }
  0x5f   : > { %p442_p5 = pneg %p441_p7 }
  0x61   : > { %p449_p1 = pnand %p448_p0, %p442_p5 }
  0x63   : > { %452 = shalt.err (!%p449_p1)
}
  0x64   : > { %s453_s29 = scalar_lea.hbm %s692_s24, 384  ;;  %s457_s8 = scalar_lea.hbm %s736_s2, 768 }
  0x65   : > { %p454_p11 = scmp.ne.s32.totalorder %s692_s24, %s453_s29  ;;  %p458_p4 = scmp.lt.u32.totalorder %s692_s24, %s736_s2 }
  0x66   : > { %p459_p10 = scmp.lt.u32.totalorder %s457_s8, %s453_s29  ;;  %p461_p6 = scmp.lt.u32.totalorder %s453_s29, %s692_s24 }
  0x67   : > { %p455_p12 = pnand %p454_p11, %p749_p13 }
  0x68   : > { %p460_p3 = por %p459_p10, %p458_p4 }
  0x69   : > { %p456_p2 = pneg %p455_p12 }
  0x6a   : > { %p462_p7 = por %p461_p6, %p460_p3 }
  0x6c   : > { %p463_p5 = pnand %p462_p7, %p456_p2 }
  0x6e   : > { %466 = shalt.err (!%p463_p5)
}
  0x6f   : > { %332 = dma.vmem_to_hbm [thread:$0]  (%p749_p13), %s687_s16, 384, %s692_s24, %s204_s20  }
  0x70 PF: > { %s230_s26 = sand.u32 1, %s497_s9   ;;  %p750_p8 = scmp.ne.s32.totalorder %s742_s22, 0 }
  0x71   : > { %p751_p9 = scmp.ge.s32.totalorder %s509_s12, 2  ;;  %s231_s7 = scalar_lea.sflag [#allocation4], %s230_s26 }
  0x73   : > { %p342_p0 = pnand %p751_p9, %p750_p8 }
  0x75   : > { %492 = dma.done.wait (!%p342_p0), %s231_s7, 384  }
  0x76   : > { %494 = vsyncadd (!%p342_p0), %s231_s7, 4294966912  ;;  %p18_p1 = scmp.ge.s32.totalorder %s554_s15, 4   ;;  %s752_s9 = smov %s501_s10 }
  0x77   : > { %s753_s10 = smov %s505_s11  ;;  %s754_s11 = smov %s566_s18 }
  0x78   : > { %s755_s12 = smov %s554_s15  ;;  %20 = sbr.rel (!%p18_p1) target bundleno = 7 (0x7), region = 86 }
  0x7f   :  { %236 = vsyncpa [#allocation3], 1 }
  0x80   :  { %238 = vsyncpa [#allocation3 + $0x1], 1 }
  0x81   :  { %239 = vsyncpa [#allocation6], 1 }
  0x82   :  { %241 = vsyncpa [#allocation6 + $0x1], 1 }
  0x83   :  { %242 = vsyncpa [#allocation4], 1 }
  0x84   :  { %244 = vsyncpa [#allocation4 + $0x1], 1 }

</bundles_post_ra>
